<compile_context>
chip_gen: v7x
topology: tpu7x:2x2x1
jax: 0.10.0
libtpu: 0.0.40
codegen_flags: <defaults>
</compile_context>

<pallas_src>
import jax
import jax.numpy as jnp
from jax.experimental import pallas as pl
from jax.experimental.pallas import tpu as pltpu


def _round_up(x: int, m: int) -> int:
    return (x + m - 1) // m * m


def _cdiv(a: int, b: int) -> int:
    return (a + b - 1) // b


def _linear_transposed_kernel(x_ref, w_ref, b_ref, o_ref):
    # x_ref : (tk, tm)  block of x stored as (in_features, batch)
    # w_ref : (tk, tn)  block of W stored K-major as (in_features, out_features)
    # b_ref : (1,  tn)  bias block tied to the j (out_features) grid axis
    # o_ref : (tm, tn)  f32 output block, resident across the K grid axis
    k = pl.program_id(2)

    # out[b, o] += sum_i x[i, b] * Wt[i, o] : contract dim 0 of both operands.
    contrib = jax.lax.dot_general(
        x_ref[...], w_ref[...],
        dimension_numbers=(((0,), (0,)), ((), ())),
        preferred_element_type=jnp.float32,
    )

    @pl.when(k == 0)
    def _first():
        o_ref[...] = contrib          # no zero-init pass, even when K fits one step

    @pl.when(k > 0)
    def _accumulate():
        o_ref[...] += contrib

    @pl.when(k == pl.num_programs(2) - 1)
    def _finalize():
        o_ref[...] += b_ref[...]      # bias added once; inner K loop stays pure MXU


def my_model_forward(x, w, b, *, tm=None, tn=None, tk=None,
                     compute_dtype=jnp.bfloat16):
    """Pallas implementation of MyModel(base=Linear).forward(x) = Linear(x.T).

    x: (in_features, batch), w: (out_features, in_features), b: (out_features,)
    returns: (batch, out_features) float32
    """
    in_features, batch = x.shape
    out_features, in_features_w = w.shape
    assert in_features_w == in_features

    dt = compute_dtype if compute_dtype is not None else x.dtype
    itemsize = jnp.dtype(dt).itemsize

    tm_auto, tn_auto = tm is None, tn is None

    # Tile selection:
    #  - N (out_features) on lanes   -> 128-multiples, cap 256 (v5e MXU is 128-wide).
    #  - M (batch) on x's lanes too  -> full dim or a 128-multiple, cap 512.
    #  - K (reduction) last in grid  -> single step when small, else a near-even
    #    split into ~1024-wide 128-multiple chunks (no 2x waste for K=1025..).
    if tm is None:
        tm = min(512, _round_up(batch, 8))
    if tn is None:
        tn = min(256, _round_up(out_features, 128))
    if tk is None:
        k_pad = _round_up(in_features, 128)
        if k_pad <= 1024:
            tk = k_pad
        else:
            tk = _round_up(_cdiv(k_pad, _cdiv(k_pad, 1024)), 128)

    # v7x megacore: "parallel" only helps with >=2 (i, j) blocks.  Split a
    # single-block grid when there is enough work to amortize the extra step.
    if (tm_auto and tn_auto
            and _cdiv(batch, tm) * _cdiv(out_features, tn) < 2
            and batch * out_features * in_features >= (1 << 20)):
        if out_features > 128:
            tn = 128
        elif batch > 128:
            tm = 128                  # stays lane-aligned for the (tk, tm) x block

    M = _round_up(batch, tm)
    N = _round_up(out_features, tn)
    K = _round_up(in_features, tk)

    # Cast to compute dtype; pad only when needed (padded rows/cols contribute 0).
    x_c = x.astype(dt)
    x_p = (x_c if (K, M) == (in_features, batch)
           else jnp.zeros((K, M), dt).at[:in_features, :batch].set(x_c))

    w_t = w.T.astype(dt)              # (in_features, out_features), K-major
    w_p = (w_t if (K, N) == (in_features, out_features)
           else jnp.zeros((K, N), dt).at[:in_features, :out_features].set(w_t))

    b_c = b.astype(jnp.float32)
    b_p = (b_c.reshape(1, N) if N == out_features
           else jnp.zeros((1, N), jnp.float32).at[0, :out_features].set(b_c))

    grid = (M // tm, N // tn, K // tk)

    # Scoped-VMEM working set: double-buffered x/W blocks + resident f32 output.
    work_bytes = (2 * (tk * tm + tk * tn) * itemsize
                  + 2 * tm * tn * 4 + 2 * tn * 4)
    vmem_limit_bytes = None
    if work_bytes > (12 << 20):       # only raise when the default would be tight
        vmem_limit_bytes = min(work_bytes + (4 << 20), 64 << 20)

    cost = pl.CostEstimate(
        flops=2 * M * N * K,
        transcendentals=0,
        bytes_accessed=(K * M + K * N) * itemsize + M * N * 4 + N * 4,
    )

    out_p = pl.pallas_call(
        _linear_transposed_kernel,
        out_shape=jax.ShapeDtypeStruct((M, N), jnp.float32),
        grid_spec=pltpu.PrefetchScalarGridSpec(
            num_scalar_prefetch=0,
            grid=grid,
            in_specs=[
                pl.BlockSpec((tk, tm), lambda i, j, k: (k, i)),   # x  (K, M)
                pl.BlockSpec((tk, tn), lambda i, j, k: (k, j)),   # Wt (K, N)
                pl.BlockSpec((1, tn), lambda i, j, k: (0, j)),    # b  (1, N)
            ],
            out_specs=pl.BlockSpec((tm, tn), lambda i, j, k: (i, j)),
        ),
        compiler_params=pltpu.CompilerParams(
            dimension_semantics=("parallel", "parallel", "arbitrary"),
            vmem_limit_bytes=vmem_limit_bytes,
        ),
        cost_estimate=cost,
    )(x_p, w_p, b_p)

    if (M, N) != (batch, out_features):
        return out_p[:batch, :out_features]
    return out_p


def reference_forward(x, w, b):
    # Pure-JAX reference of base(x.T) with base = Linear(w, b)
    return x.T @ w.T + b[None, :]


if __name__ == "__main__":
    key = jax.random.PRNGKey(0)
    k_x, k_w, k_b = jax.random.split(key, 3)

    in_features = 32
    out_features = 16
    batch = 8

    # x arrives as (in_features, batch); the module transposes it before base.
    x = jax.random.normal(k_x, (in_features, batch), dtype=jnp.float32)

    # Deterministic PyTorch-Linear-style init: U(-1/sqrt(in), 1/sqrt(in))
    bound = 1.0 / jnp.sqrt(jnp.float32(in_features))
    w = jax.random.uniform(k_w, (out_features, in_features),
                           minval=-bound, maxval=bound, dtype=jnp.float32)
    b = jax.random.uniform(k_b, (out_features,),
                           minval=-bound, maxval=bound, dtype=jnp.float32)

    ref = reference_forward(x, w, b)

    # Exact f32 MXU path.
    out_f32 = jax.block_until_ready(
        my_model_forward(x, w, b, compute_dtype=jnp.float32))
    assert out_f32.shape == (batch, out_features)
    assert jnp.allclose(out_f32, ref, atol=1e-5, rtol=1e-5)

    # Default bf16 MXU path (f32 accumulation) -- looser tolerance by design.
    out_bf16 = jax.block_until_ready(my_model_forward(x, w, b))
    assert out_bf16.shape == (batch, out_features)
    assert jnp.allclose(out_bf16, ref, atol=5e-2, rtol=5e-2)

    print("KERNEL_OK")
</pallas_src>

<mosaic_0001>
module attributes {stable_mosaic.version = 11 : i64} {
  func.func @_linear_transposed_kernel(%arg0: i32, %arg1: i32, %arg2: i32, %arg3: memref<128x8xf32, #tpu.memory_space<vmem>>, %arg4: memref<128x128xf32, #tpu.memory_space<vmem>>, %arg5: memref<1x128xf32, #tpu.memory_space<vmem>>, %arg6: memref<8x128xf32, #tpu.memory_space<vmem>>) attributes {dimension_semantics = [#tpu.dimension_semantics<parallel>, #tpu.dimension_semantics<parallel>, #tpu.dimension_semantics<arbitrary>], iteration_bounds = array<i64: 1, 1, 1>, scalar_prefetch = 0 : i64, scratch_operands = 0 : i64, tpu.core_type = #tpu.core_type<tc>, window_params = [{transform_indices = @transform_0, window_bounds = array<i64: 128, 8>}, {transform_indices = @transform_1, window_bounds = array<i64: 128, 128>}, {transform_indices = @transform_2, window_bounds = array<i64: 1, 128>}, {transform_indices = @transform_3, window_bounds = array<i64: 8, 128>}]} {
    %c0 = arith.constant 0 : index
    %c0_0 = arith.constant 0 : index
    %0 = vector.load %arg3[%c0, %c0_0] : memref<128x8xf32, #tpu.memory_space<vmem>>, vector<128x8xf32>
    %c0_1 = arith.constant 0 : index
    %c0_2 = arith.constant 0 : index
    %1 = vector.load %arg4[%c0_1, %c0_2] : memref<128x128xf32, #tpu.memory_space<vmem>>, vector<128x128xf32>
    %cst = arith.constant dense<0.000000e+00> : vector<8x128xf32>
    %2 = tpu.matmul %0, %1, %cst {dimension_numbers = #tpu.dot_dimension_numbers<[0], [0], [1], [1], [0, 1, 1, 1], [], []>} : vector<128x8xf32>, vector<128x128xf32>, vector<8x128xf32> -> vector<8x128xf32>
    %c0_i32 = arith.constant 0 : i32
    %3 = arith.cmpi eq, %arg2, %c0_i32 : i32
    %4 = arith.extui %3 : i1 to i32
    %c0_i32_3 = arith.constant 0 : i32
    %5 = arith.cmpi ne, %4, %c0_i32_3 : i32
    scf.if %5 {
      %c0_8 = arith.constant 0 : index
      %c0_9 = arith.constant 0 : index
      %12 = vector.load %arg6[%c0_8, %c0_9] : memref<8x128xf32, #tpu.memory_space<vmem>>, vector<8x128xf32>
      tpu.vector_store %arg6[%c0_8, %c0_9], %2 {strides = array<i32>} : memref<8x128xf32, #tpu.memory_space<vmem>>, vector<8x128xf32>,
    } else {
    }
    %c0_i32_4 = arith.constant 0 : i32
    %6 = arith.cmpi sgt, %arg2, %c0_i32_4 : i32
    %7 = arith.extui %6 : i1 to i32
    %c0_i32_5 = arith.constant 0 : i32
    %8 = arith.cmpi ne, %7, %c0_i32_5 : i32
    scf.if %8 {
      %c0_8 = arith.constant 0 : index
      %c0_9 = arith.constant 0 : index
      %12 = vector.load %arg6[%c0_8, %c0_9] : memref<8x128xf32, #tpu.memory_space<vmem>>, vector<8x128xf32>
      %13 = arith.addf %12, %2 : vector<8x128xf32>
      %c0_10 = arith.constant 0 : index
      %c0_11 = arith.constant 0 : index
      %14 = vector.load %arg6[%c0_10, %c0_11] : memref<8x128xf32, #tpu.memory_space<vmem>>, vector<8x128xf32>
      tpu.vector_store %arg6[%c0_10, %c0_11], %13 {strides = array<i32>} : memref<8x128xf32, #tpu.memory_space<vmem>>, vector<8x128xf32>,
    } else {
    }
    %c0_i32_6 = arith.constant 0 : i32
    %9 = arith.cmpi eq, %arg2, %c0_i32_6 : i32
    %10 = arith.extui %9 : i1 to i32
    %c0_i32_7 = arith.constant 0 : i32
    %11 = arith.cmpi ne, %10, %c0_i32_7 : i32
    scf.if %11 {
      %c0_8 = arith.constant 0 : index
      %c0_9 = arith.constant 0 : index
      %12 = vector.load %arg6[%c0_8, %c0_9] : memref<8x128xf32, #tpu.memory_space<vmem>>, vector<8x128xf32>
      %c0_10 = arith.constant 0 : index
      %c0_11 = arith.constant 0 : index
      %13 = vector.load %arg5[%c0_10, %c0_11] : memref<1x128xf32, #tpu.memory_space<vmem>>, vector<1x128xf32>
      %14 = vector.broadcast %13 : vector<1x128xf32> to vector<8x128xf32>
      %15 = arith.addf %12, %14 : vector<8x128xf32>
      %c0_12 = arith.constant 0 : index
      %c0_13 = arith.constant 0 : index
      %16 = vector.load %arg6[%c0_12, %c0_13] : memref<8x128xf32, #tpu.memory_space<vmem>>, vector<8x128xf32>
      tpu.vector_store %arg6[%c0_12, %c0_13], %15 {strides = array<i32>} : memref<8x128xf32, #tpu.memory_space<vmem>>, vector<8x128xf32>,
    } else {
    }
    return
  }
  func.func @transform_0(%arg0: i32, %arg1: i32, %arg2: i32) -> (i32, i32) {
    %c0_i32 = arith.constant 0 : i32
    return %arg2, %arg0 : i32, i32
  }
  func.func @transform_1(%arg0: i32, %arg1: i32, %arg2: i32) -> (i32, i32) {
    %c0_i32 = arith.constant 0 : i32
    return %arg2, %arg1 : i32, i32
  }
  func.func @transform_2(%arg0: i32, %arg1: i32, %arg2: i32) -> (i32, i32) {
    %c0_i32 = arith.constant 0 : i32
    %c0_i32_0 = arith.constant 0 : i32
    return %c0_i32, %arg1 : i32, i32
  }
  func.func @transform_3(%arg0: i32, %arg1: i32, %arg2: i32) -> (i32, i32) {
    %c0_i32 = arith.constant 0 : i32
    return %arg0, %arg1 : i32, i32
  }
}

</mosaic_0001>

<bundles_post_ra>
// kernel: tpu_custom_call.1
= control target key start
LH: loop header
LB: loop body
LE: loop exit
PB: predicated region body
PF: predicated region fallthrough
CT: control target
= control target key end

     0   :  { %v293_v1 = vmov 0.0|0.0   ;;  %vm294_vm0 = vmmov 0   ;;  %v295_v3 = vmov 0.0   ;;  %s428_s0 = inlined_call_operand.vmem [shape: f32[128,8], index: 0, kind: input, shape index: {}]   ;;  %s429_s1 = inlined_call_operand.vmem [shape: f32[128,128], index: 1, kind: input, shape index: {}]   ;;  %s430_s2 = inlined_call_operand.vmem [shape: f32[1,128], index: 2, kind: input, shape index: {}]   ;;  %s431_s3 = inlined_call_operand.hbm [shape: f32[8,128], index: 3, kind: output, shape index: {}]  }
   0x1   :  { %v15_v0 = vld [vmem:[%s428_s0] sm:$0xff]  ;;  %241 = vmatprep.subr.bf16.mxu0 %v293_v1  ;;  %v16_v2 = vld [vmem:[%s428_s0 + $0x8] sm:$0xff]  ;;  %238 = vmatprep.mubr.msk.f32.mxu0 %vm294_vm0, %v295_v3  ;;  %v17_v6 = vld [vmem:[%s428_s0 + $0x10] sm:$0xff] }
   0x2   :  { %47 = vxpose.xlu0.b32.start [1/16] (narrow) %v15_v0, 8  ;;  %v31_v4 = vld [vmem:[%s429_s1] sm:$0xff]  ;;  %v32_v5 = vld [vmem:[%s429_s1 + $0x8] sm:$0xff]  ;;  %v33_v8 = vld [vmem:[%s429_s1 + $0x10] sm:$0xff] }
   0x3   :  { %v242_v7 = vpack.c.bf16 %v32_v5, %v31_v4  ;;  %v34_v9 = vld [vmem:[%s429_s1 + $0x18] sm:$0xff]  ;;  %v35_v11 = vld [vmem:[%s429_s1 + $0x20] sm:$0xff]  ;;  %v36_v12 = vld [vmem:[%s429_s1 + $0x28] sm:$0xff] }
   0x4   :  { %v245_v10 = vpack.c.bf16 %v34_v9, %v33_v8  ;;  %v18_v13 = vld [vmem:[%s428_s0 + $0x18] sm:$0xff] }
   0x5   :  { %243 = vmatpush3.bf16.msra.mxu0 %v242_v7 }
   0x6   :  { %48 = vxpose.xlu0.b32.cont [2/16] (narrow) %v16_v2, 8  ;;  %244 = vmatprep.subr.bf16.mxu0 %v293_v1 }
   0xa   :  { %49 = vxpose.xlu0.b32.cont [3/16] (narrow) %v17_v6, 8 }
   0xb   :  { %8 = vsyncpa [#allocation3], 0  ;;  %246 = vmatpush3.bf16.msra.mxu0 %v245_v10  ;;  %v248_v14 = vpack.c.bf16 %v36_v12, %v35_v11  ;;  %v37_v15 = vld [vmem:[%s429_s1 + $0x30] sm:$0xff]  ;;  %v38_v16 = vld [vmem:[%s429_s1 + $0x38] sm:$0xff]  ;;  %s296_s23 = smov [#allocation2]  }
   0xc   :  { %247 = vmatprep.subr.bf16.mxu0 %v293_v1  ;;  %v19_v17 = vld [vmem:[%s428_s0 + $0x20] sm:$0xff]  ;;  %v251_v18 = vpack.c.bf16 %v38_v16, %v37_v15  ;;  %v40_v20 = vld [vmem:[%s429_s1 + $0x48] sm:$0xff]  ;;  %v41_v23 = vld [vmem:[%s429_s1 + $0x50] sm:$0xff]  ;;  %s180_s24 = sshll.u32 %s296_s23, 4  ;;  %s181_s24 = int_to_ptr.vmem [resolvable:$true] %s180_s24 }
   0xd   :  { %v39_v19 = vld [vmem:[%s429_s1 + $0x40] sm:$0xff]  ;;  %v20_v21 = vld [vmem:[%s428_s0 + $0x28] sm:$0xff]  ;;  %v42_v24 = vld [vmem:[%s429_s1 + $0x58] sm:$0xff]  ;;  %s269_s25 = scalar_lea.vmem %s181_s24, 128  ;;  %p274_p1 = scmp.lt.s32.totalorder %s181_s24, %s181_s24 }
   0xe   :  { %50 = vxpose.xlu0.b32.cont [4/16] (narrow) %v18_v13, 8  ;;  %v254_v22 = vpack.c.bf16 %v40_v20, %v39_v19  ;;  %v21_v25 = vld [vmem:[%s428_s0 + $0x30] sm:$0xff]  ;;  %v257_v26 = vpack.c.bf16 %v42_v24, %v41_v23  ;;  %v43_v27 = vld [vmem:[%s429_s1 + $0x60] sm:$0xff]  ;;  %v44_v28 = vld [vmem:[%s429_s1 + $0x68] sm:$0xff]  ;;  %p270_p0 = scmp.ne.s32.totalorder %s181_s24, %s269_s25  ;;  %p275_p2 = scmp.lt.s32.totalorder %s269_s25, %s269_s25 }
   0xf   :  { %249 = vmatpush3.bf16.msra.mxu0 %v248_v14  ;;  %v22_v29 = vld [vmem:[%s428_s0 + $0x38] sm:$0xff]  ;;  %v260_v30 = vpack.c.bf16 %v44_v28, %v43_v27  ;;  %v45_v31 = vld [vmem:[%s429_s1 + $0x70] sm:$0xff]  ;;  %v23_v33 = vld [vmem:[%s428_s0 + $0x40] sm:$0xff] }
  0x10   :  { %250 = vmatprep.subr.bf16.mxu0 %v293_v1  ;;  %v46_v32 = vld [vmem:[%s429_s1 + $0x78] sm:$0xff]  ;;  %v24_v35 = vld [vmem:[%s428_s0 + $0x48] sm:$0xff]  ;;  %v25_v36 = vld [vmem:[%s428_s0 + $0x50] sm:$0xff]  ;;  %p276_p3 = por %p275_p2, %p274_p1 }
  0x11   :  { %v263_v34 = vpack.c.bf16 %v46_v32, %v45_v31  ;;  %v26_v37 = vld [vmem:[%s428_s0 + $0x58] sm:$0xff]  ;;  %v27_v38 = vld [vmem:[%s428_s0 + $0x60] sm:$0xff]  ;;  %v28_v39 = vld [vmem:[%s428_s0 + $0x68] sm:$0xff] }
  0x12   :  { %51 = vxpose.xlu0.b32.cont [5/16] (narrow) %v19_v17, 8  ;;  %v29_v40 = vld [vmem:[%s428_s0 + $0x70] sm:$0xff]  ;;  %v30_v41 = vld [vmem:[%s428_s0 + $0x78] sm:$0xff]  ;;  %v188_v43 = vld [vmem:[%s430_s2] ss:$0 sm:$0xff]  ;;  %p277_p4 = pnand %p276_p3, %p270_p0 }
  0x13   :  { %252 = vmatpush3.bf16.msra.mxu0 %v251_v18 }
  0x14   :  { %253 = vmatprep.subr.bf16.mxu0 %v293_v1 }
  0x16   :  { %52 = vxpose.xlu0.b32.cont [6/16] (narrow) %v20_v21, 8 }
  0x17   :  { %255 = vmatpush3.bf16.msra.mxu0 %v254_v22 }
  0x18   :  { %256 = vmatprep.subr.bf16.mxu0 %v293_v1 }
  0x1a   :  { %53 = vxpose.xlu0.b32.cont [7/16] (narrow) %v21_v25, 8 }
  0x1b   :  { %258 = vmatpush3.bf16.msra.mxu0 %v257_v26 }
  0x1c   :  { %259 = vmatprep.subr.bf16.mxu0 %v293_v1 }
  0x1e   :  { %54 = vxpose.xlu0.b32.cont [8/16] (narrow) %v22_v29, 8 }
  0x1f   :  { %261 = vmatpush3.bf16.msra.mxu0 %v260_v30 }
  0x20   :  { %262 = vmatprep.subr.bf16.mxu0 %v293_v1 }
  0x22   :  { %55 = vxpose.xlu0.b32.cont [9/16] (narrow) %v23_v33, 8 }
  0x23   :  { %264 = vmatpush3.bf16.msra.mxu0 %v263_v34 }
  0x26   :  { %56 = vxpose.xlu0.b32.cont [10/16] (narrow) %v24_v35, 8 }
  0x2a   :  { %57 = vxpose.xlu0.b32.cont [11/16] (narrow) %v25_v36, 8 }
  0x2e   :  { %58 = vxpose.xlu0.b32.cont [12/16] (narrow) %v26_v37, 8 }
  0x32   :  { %59 = vxpose.xlu0.b32.cont [13/16] (narrow) %v27_v38, 8 }
  0x36   :  { %60 = vxpose.xlu0.b32.cont [14/16] (narrow) %v28_v39, 8 }
  0x3a   :  { %61 = vxpose.xlu0.b32.cont [15/16] (narrow) %v29_v40, 8 }
  0x3e   :  { %62 = vxpose.xlu0.b32.end [16/16] (narrow) %v30_v41, 8 }
  0x82   :  { %v63_v42 = vpop.trf.xlu0 }
  0x83   :  { %239 = vmatmul.mubr.f32.vlgmr.msra.gmra.mrb[0].mxu0 %v63_v42 }
 0x156   :  { %v145_v44 = vpop.f32.mrb[0].mxu0 }
 0x157   :  { %v240_v45 = vpop.f32.mrb[1].mxu0  ;;  %v172_v46 = vadd.f32 %v188_v43, %v145_v44 }
 0x159   :  { %173 = vst [vmem:[#allocation2] sm:$0xff] %v172_v46 }
 0x15a   :  { %280 = shalt.err (!%p277_p4)
}
 0x15b   :  { %s281_s27 = scalar_lea.hbm %s431_s3, 128 }
 0x15c   :  { %p282_p5 = scmp.ne.s32.totalorder %s431_s3, %s281_s27  ;;  %p285_p6 = scmp.lt.u32.totalorder %s281_s27, %s431_s3 }
 0x15e   :  { %p287_p7 = pnand %p285_p6, %p282_p5 }
 0x160   :  { %290 = shalt.err (!%p287_p7)
}
 0x161   :  { %183 = dma.vmem_to_hbm [thread:$0]  %s181_s24, 128, %s431_s3, [#allocation3]  }
 0x162   :  { %291 = dma.done.wait [#allocation3], 128  }
 0x163   :  { %292 = vsyncadd [#allocation3], 4294967168 }
 0x164   :  { %187 = vsyncpa [#allocation3], 1 }

</bundles_post_ra>
